<compile_context>
chip_gen: v7x
topology: tpu7x:2x2x1
jax: 0.10.0
libtpu: 0.0.40
codegen_flags: <defaults>
</compile_context>

<pallas_src>
import jax
import jax.numpy as jnp
from jax.experimental import pallas as pl
from jax.experimental.pallas import tpu as pltpu


def _round_up(x, m):
    return ((x + m - 1) // m) * m


# -----------------------------------------------------------------------------
# Kernels
# -----------------------------------------------------------------------------

def _single_shot_kernel(x_ref, w_ref, b_ref, o_ref):
    # One fused affine map on the MXU: (B, K) @ (K, Np) + (1, Np).
    o_ref[...] = (
        jnp.dot(x_ref[...], w_ref[...], preferred_element_type=jnp.float32)
        + b_ref[...]
    ).astype(o_ref.dtype)


def _tiled_kernel(x_ref, w_ref, b_ref, o_ref, acc_ref):
    # Grid = (M tiles, K tiles); K is the reduction axis (last, "arbitrary").
    k = pl.program_id(1)

    @pl.when(k == 0)
    def _():
        acc_ref[...] = jnp.zeros_like(acc_ref)

    acc_ref[...] += jnp.dot(
        x_ref[...], w_ref[...], preferred_element_type=jnp.float32
    )

    @pl.when(k == pl.num_programs(1) - 1)
    def _():
        o_ref[...] = (acc_ref[...] + b_ref[...]).astype(o_ref.dtype)


# -----------------------------------------------------------------------------
# Wrappers
# -----------------------------------------------------------------------------

def _single_shot_forward(x, wf_pad, bf_pad):
    B, K = x.shape
    Np = wf_pad.shape[1]
    cost = pl.CostEstimate(
        flops=2 * B * K * Np,
        transcendentals=0,
        bytes_accessed=4 * (B * K + K * Np + Np + B * Np),
    )
    # No grid -> single invocation, whole operands resident in VMEM, no pointless
    # double-buffering. Output block is (B, 128*n): lane-dense store.
    return pl.pallas_call(
        _single_shot_kernel,
        out_shape=jax.ShapeDtypeStruct((B, Np), jnp.float32),
        cost_estimate=cost,
    )(x, wf_pad, bf_pad)


def _tiled_forward(x, wf_pad, bf_pad, *, block_m=128, block_k=512):
    B, K = x.shape
    Np = wf_pad.shape[1]

    tm = min(block_m, _round_up(B, 8))
    tk = min(block_k, _round_up(K, 128))
    Mp = _round_up(B, tm)
    Kp = _round_up(K, tk)

    x_p = x
    if (Mp, Kp) != (B, K):
        x_p = jnp.zeros((Mp, Kp), x.dtype).at[:B, :K].set(x)
    w_p = wf_pad
    if Kp != K:
        w_p = jnp.zeros((Kp, Np), wf_pad.dtype).at[:K, :].set(wf_pad)

    grid = (Mp // tm, Kp // tk)
    cost = pl.CostEstimate(
        flops=2 * Mp * Kp * Np,
        transcendentals=0,
        bytes_accessed=4 * (Mp * Kp + Kp * Np + Np + Mp * Np),
    )
    out = pl.pallas_call(
        _tiled_kernel,
        out_shape=jax.ShapeDtypeStruct((Mp, Np), jnp.float32),
        grid_spec=pltpu.PrefetchScalarGridSpec(
            num_scalar_prefetch=0,
            grid=grid,
            in_specs=[
                pl.BlockSpec((tm, tk), lambda i, k: (i, k)),   # activations
                pl.BlockSpec((tk, Np), lambda i, k: (k, 0)),   # fused weight tile
                pl.BlockSpec((1, Np), lambda i, k: (0, 0)),    # fused bias (resident)
            ],
            out_specs=pl.BlockSpec((tm, Np), lambda i, k: (i, 0)),
            scratch_shapes=[pltpu.VMEM((tm, Np), jnp.float32)],
        ),
        compiler_params=pltpu.CompilerParams(
            # batch tiles shard across TCs on v7x; K is the reduction axis.
            dimension_semantics=("parallel", "arbitrary"),
        ),
        cost_estimate=cost,
    )(x_p, w_p, bf_pad)
    return out[:B]


def combine10_image_classifier(x, w1, b1, w2, b2, *, force_tiled=False,
                               vmem_budget_bytes=8 * 1024 * 1024):
    """Fused forward pass of Combine10ImageClassifier (eval mode).

    x : (B, input_size) float32
    w1: (input_size, hidden)  b1: (hidden,)   (regressor1.weight pre-transposed)
    w2: (hidden, classes)     b2: (classes,)  (regressor2.weight pre-transposed)
    returns (B, classes) float32
    """
    B, K = x.shape
    classes = w2.shape[1]

    # Linear -> Linear with no nonlinearity: collapse once, outside the kernel.
    wf = jnp.dot(w1, w2, preferred_element_type=jnp.float32)                         # (K, classes)
    bf = jnp.dot(b1[None, :], w2, preferred_element_type=jnp.float32) + b2[None, :]  # (1, classes)

    # Lane-dense output: pad N up to a full 128-lane width (zeros in the padding).
    Np = _round_up(max(classes, 128), 128)
    wf_pad = jnp.zeros((K, Np), jnp.float32).at[:, :classes].set(wf)
    bf_pad = jnp.zeros((1, Np), jnp.float32).at[:, :classes].set(bf)

    footprint = 4 * (B * K + K * Np + Np + B * Np)
    if force_tiled or footprint > vmem_budget_bytes:
        out = _tiled_forward(x, wf_pad, bf_pad)
    else:
        out = _single_shot_forward(x, wf_pad, bf_pad)
    return out[:, :classes]


# -----------------------------------------------------------------------------
# Reference & test
# -----------------------------------------------------------------------------

def _reference(x, w1, b1, w2, b2):
    h = x @ w1 + b1
    return h @ w2 + b2


if __name__ == "__main__":
    key = jax.random.PRNGKey(0)

    def make_case(k, B, input_size, hidden, classes):
        kx, kw1, kb1, kw2, kb2 = jax.random.split(k, 5)
        x = jax.random.normal(kx, (B, input_size), dtype=jnp.float32)
        lim1 = 1.0 / (input_size ** 0.5)
        lim2 = 1.0 / (hidden ** 0.5)
        w1 = jax.random.uniform(kw1, (input_size, hidden), jnp.float32, -lim1, lim1)
        b1 = jax.random.uniform(kb1, (hidden,), jnp.float32, -lim1, lim1)
        w2 = jax.random.uniform(kw2, (hidden, classes), jnp.float32, -lim2, lim2)
        b2 = jax.random.uniform(kb2, (classes,), jnp.float32, -lim2, lim2)
        return x, w1, b1, w2, b2

    k1, k2 = jax.random.split(key)

    # Case 1: module defaults (input_size=20, hidden=32, classes=2) -> single-shot path.
    x, w1, b1, w2, b2 = make_case(k1, 8, 20, 32, 2)
    out = jax.block_until_ready(combine10_image_classifier(x, w1, b1, w2, b2))
    ref = _reference(x, w1, b1, w2, b2)
    assert out.shape == (8, 2)
    assert jnp.allclose(out, ref, atol=1e-4, rtol=1e-4), "mismatch vs reference (small)"

    # Case 2: larger, unaligned shapes -> exercises the K-tiled accumulator path
    # (grid (2, 2): M and K padding, pl.when init/finalize, parallel batch axis).
    x, w1, b1, w2, b2 = make_case(k2, 200, 700, 48, 3)
    out = jax.block_until_ready(
        combine10_image_classifier(x, w1, b1, w2, b2, force_tiled=True))
    ref = _reference(x, w1, b1, w2, b2)
    assert out.shape == (200, 3)
    assert jnp.allclose(out, ref, atol=1e-4, rtol=1e-4), "mismatch vs reference (tiled)"

    print("KERNEL_OK")
</pallas_src>

<mosaic_0001>
module attributes {stable_mosaic.version = 11 : i64} {
  func.func @_single_shot_kernel(%arg0: memref<8x20xf32, #tpu.memory_space<vmem>>, %arg1: memref<20x128xf32, #tpu.memory_space<vmem>>, %arg2: memref<1x128xf32, #tpu.memory_space<vmem>>, %arg3: memref<8x128xf32, #tpu.memory_space<vmem>>) attributes {dimension_semantics = [], scalar_prefetch = 0 : i64, scratch_operands = 0 : i64, tpu.core_type = #tpu.core_type<tc>} {
    %c0 = arith.constant 0 : index
    %c0_0 = arith.constant 0 : index
    %0 = vector.load %arg0[%c0, %c0_0] : memref<8x20xf32, #tpu.memory_space<vmem>>, vector<8x20xf32>
    %c0_1 = arith.constant 0 : index
    %c0_2 = arith.constant 0 : index
    %1 = vector.load %arg1[%c0_1, %c0_2] : memref<20x128xf32, #tpu.memory_space<vmem>>, vector<20x128xf32>
    %cst = arith.constant dense<0.000000e+00> : vector<8x128xf32>
    %2 = tpu.matmul %0, %1, %cst {dimension_numbers = #tpu.dot_dimension_numbers<[1], [0], [0], [1], [0, 0, 1, 1], [], []>} : vector<8x20xf32>, vector<20x128xf32>, vector<8x128xf32> -> vector<8x128xf32>
    %c0_3 = arith.constant 0 : index
    %c0_4 = arith.constant 0 : index
    %3 = vector.load %arg2[%c0_3, %c0_4] : memref<1x128xf32, #tpu.memory_space<vmem>>, vector<1x128xf32>
    %4 = vector.broadcast %3 : vector<1x128xf32> to vector<8x128xf32>
    %5 = arith.addf %2, %4 : vector<8x128xf32>
    %c0_5 = arith.constant 0 : index
    %c0_6 = arith.constant 0 : index
    %6 = vector.load %arg3[%c0_5, %c0_6] : memref<8x128xf32, #tpu.memory_space<vmem>>, vector<8x128xf32>
    tpu.vector_store %arg3[%c0_5, %c0_6], %5 {strides = array<i32>} : memref<8x128xf32, #tpu.memory_space<vmem>>, vector<8x128xf32>,
    return
  }
}

</mosaic_0001>

<bundles_post_ra>
// kernel: tpu_custom_call.1
= control target key start
LH: loop header
LB: loop body
LE: loop exit
PB: predicated region body
PF: predicated region fallthrough
CT: control target
= control target key end

     0   :  { %8 = vsyncpa [#allocation3], 0  ;;  %s320_s0 = inlined_call_operand.hbm [shape: f32[8,20], index: 0, kind: input, shape index: {}]   ;;  %s321_s1 = inlined_call_operand.hbm [shape: f32[20,128], index: 1, kind: input, shape index: {}]   ;;  %s322_s2 = inlined_call_operand.vmem [shape: f32[1,128], index: 2, kind: input, shape index: {}]   ;;  %s323_s3 = inlined_call_operand.hbm [shape: f32[8,128], index: 3, kind: output, shape index: {}]  }
   0x1   :  { %9 = vsyncpa [#allocation6], 0 }
   0x2   :  { %10 = vsyncpa [#allocation4], 0  ;;  %s246_s12 = smov [#allocation2]   ;;  %s247_s14 = smov [#allocation5]  }
   0x3   :  { %s17_s13 = sshll.u32 %s246_s12, 4  ;;  %s26_s15 = sshll.u32 %s247_s14, 4  ;;  %s18_s13 = int_to_ptr.vmem [resolvable:$true] %s17_s13  ;;  %s274_s15 = int_to_ptr.vmem [resolvable:$true] %s26_s15 }
   0x4   :  { %s174_s18 = scalar_lea.hbm %s320_s0, 128 }
   0x5   :  { %p175_p0 = scmp.ne.s32.totalorder %s320_s0, %s174_s18  ;;  %p178_p1 = scmp.lt.u32.totalorder %s174_s18, %s320_s0 }
   0x7   :  { %p180_p2 = pnand %p178_p1, %p175_p0 }
   0x9   :  { %183 = shalt.err (!%p180_p2)
}
   0xa   :  { %s184_s23 = scalar_lea.vmem %s18_s13, 128  ;;  %p189_p4 = scmp.lt.s32.totalorder %s18_s13, %s18_s13 }
   0xb   :  { %p185_p3 = scmp.ne.s32.totalorder %s18_s13, %s184_s23  ;;  %p190_p5 = scmp.lt.s32.totalorder %s184_s23, %s184_s23 }
   0xd   :  { %p191_p6 = por %p190_p5, %p189_p4 }
   0xf   :  { %p192_p7 = pnand %p191_p6, %p185_p3 }
  0x11   :  { %195 = shalt.err (!%p192_p7)
}
  0x12   :  { %20 = dma.hbm_to_vmem [thread:$0]  %s320_s0, 128, %s18_s13, [#allocation3]  }
  0x13   :  { %s196_s28 = scalar_lea.hbm %s321_s1, 384 }
  0x14   :  { %p197_p8 = scmp.ne.s32.totalorder %s321_s1, %s196_s28  ;;  %p200_p9 = scmp.lt.u32.totalorder %s196_s28, %s321_s1 }
  0x16   :  { %p202_p10 = pnand %p200_p9, %p197_p8 }
  0x18   :  { %205 = shalt.err (!%p202_p10)
}
  0x19   :  { %s206_s6 = scalar_lea.vmem %s274_s15, 384  ;;  %p211_p12 = scmp.lt.s32.totalorder %s274_s15, %s274_s15 }
  0x1a   :  { %p207_p11 = scmp.ne.s32.totalorder %s274_s15, %s206_s6  ;;  %p212_p13 = scmp.lt.s32.totalorder %s206_s6, %s206_s6 }
  0x1c   :  { %p213_p0 = por %p212_p13, %p211_p12 }
  0x1e   :  { %p214_p1 = pnand %p213_p0, %p207_p11 }
  0x20   :  { %217 = shalt.err (!%p214_p1)
}
  0x21   :  { %s248_s0 = smov 128   ;;  %s249_s7 = smov 8  }
  0x22   :  { %32 = dma.hbm_to_vmem [thread:$0]  %s321_s1, 384, %s274_s15, [#allocation6], %s248_s0, %s248_s0, %s249_s7  }
  0x23   :  { %240 = dma.done.wait [#allocation3], 128  }
  0x24   :  { %241 = vsyncadd [#allocation3], 4294967168 }
  0x25   :  { %242 = dma.done.wait [#allocation6], 384  }
  0x26   :  { %243 = vsyncadd [#allocation6], 4294966912  ;;  %v250_v0 = vmov 0.0|0.0   ;;  %vm251_vm0 = vmmov 0   ;;  %v252_v1 = vmov 0.0   ;;  %v42_v2 = vld [vmem:[#allocation5] sm:$0xff] }
  0x27   :  { %163 = vmatprep.subr.bf16.mxu0 %v250_v0  ;;  %160 = vmatprep.mubr.msk.f32.mxu0 %vm251_vm0, %v252_v1  ;;  %v43_v3 = vld [vmem:[#allocation5 + $0x8] sm:$0xff]  ;;  %v44_v5 = vld [vmem:[#allocation5 + $0x10] sm:$0xf]  ;;  %vm56_vm1 = vcmask 1043456   ;;  %v41_v6 = vld [vmem:[#allocation2] sm:$0xff]  ;;  %vm52_vm2 = vcmask 162816  }
  0x28   :  { %v164_v4 = vpack.c.bf16 %v43_v3, %v42_v2  ;;  %v147_v7 = vld [vmem:[%s322_s2] ss:$0 sm:$0xff]  ;;  %s253_s11 = smov [#allocation7]  }
  0x29   :  { %s137_s12 = sshll.u32 %s253_s11, 4  ;;  %s138_s12 = int_to_ptr.vmem [resolvable:$true] %s137_s12 }
  0x2a   :  { %165 = vmatpush3.bf16.msra.mxu0 %v164_v4  ;;  %s218_s13 = scalar_lea.vmem %s138_s12, 128  ;;  %p223_p3 = scmp.lt.s32.totalorder %s138_s12, %s138_s12 }
  0x2b   :  { %158 = vmatprep.subr.mxu0 %v252_v1  ;;  %p219_p2 = scmp.ne.s32.totalorder %s138_s12, %s218_s13  ;;  %p224_p4 = scmp.lt.s32.totalorder %s218_s13, %s218_s13 }
  0x2d   :  { %p225_p5 = por %p224_p4, %p223_p3 }
  0x2e   :  { %159 = vmatpush3.msk.msra.mxu0 %vm56_vm1, %v44_v5 }
  0x2f   :  { %161 = vmatmul.mubr.msk.f32.vlgmr.msra.gmra.mrb[0].mxu0 %vm52_vm2, %v41_v6  ;;  %p226_p6 = pnand %p225_p5, %p219_p2 }
 0x102   :  { %v126_v8 = vpop.f32.mrb[0].mxu0 }
 0x103   :  { %v127_v9 = vadd.f32 %v147_v7, %v126_v8  ;;  %v162_v10 = vpop.f32.mrb[1].mxu0 }
 0x105   :  { %130 = vst [vmem:[#allocation7] sm:$0xff] %v127_v9 }
 0x106   :  { %229 = shalt.err (!%p226_p6)
}
 0x107   :  { %s230_s16 = scalar_lea.hbm %s323_s3, 128 }
 0x108   :  { %p231_p7 = scmp.ne.s32.totalorder %s323_s3, %s230_s16  ;;  %p234_p8 = scmp.lt.u32.totalorder %s230_s16, %s323_s3 }
 0x10a   :  { %p236_p9 = pnand %p234_p8, %p231_p7 }
 0x10c   :  { %239 = shalt.err (!%p236_p9)
}
 0x10d   :  { %140 = dma.vmem_to_hbm [thread:$0]  %s138_s12, 128, %s323_s3, [#allocation4]  }
 0x10e   :  { %244 = dma.done.wait [#allocation4], 128  }
 0x10f   :  { %245 = vsyncadd [#allocation4], 4294967168 }
 0x110   :  { %144 = vsyncpa [#allocation3], 1 }
 0x111   :  { %145 = vsyncpa [#allocation6], 1 }
 0x112   :  { %146 = vsyncpa [#allocation4], 1 }

</bundles_post_ra>
